<compile_context>
chip_gen: v5e
topology: v5e:2x2
jax: 0.10.0
libtpu: 0.0.40
codegen_flags: <defaults>
</compile_context>

<pallas_src>
import functools

import jax
import jax.numpy as jnp
from jax.experimental import pallas as pl
from jax.experimental.pallas import tpu as pltpu


# ----------------------------------- kernel ---------------------------------
def _mapnet_criterion_kernel(w_ref,      # SMEM (5,)  [wt, wq, wvt, wvq, bias]
                             slab_ref,   # VMEM (2, R_pad, bn)  [pred; targ]
                             out_ref,    # VMEM (1, 1)          loss
                             acc_t,      # VMEM (1, bn) per-lane sum |abs t err|
                             acc_q,      # VMEM (1, bn) per-lane sum |abs q err|
                             acc_vt,     # VMEM (1, bn) per-lane sum |vo  t err|
                             acc_vq,     # VMEM (1, bn) per-lane sum |vo  q err|
                             *, T, valid_rows):
    f32 = jnp.float32
    pid = pl.program_id(0)

    @pl.when(pid == 0)
    def _():
        acc_t[...] = jnp.zeros_like(acc_t)
        acc_q[...] = jnp.zeros_like(acc_q)
        acc_vt[...] = jnp.zeros_like(acc_vt)
        acc_vq[...] = jnp.zeros_like(acc_vq)

    # d = pred - targ ; (R_pad, bn), row r = component*T + time.
    # bf16 inputs are upcast here, in-kernel, so HBM traffic stays narrow.
    d = slab_ref[0].astype(f32) - slab_ref[1].astype(f32)
    rows = d.shape[0]

    row_id = jax.lax.broadcasted_iota(jnp.int32, (rows, 1), 0)
    is_trans = row_id < (3 * T)                        # translation rows

    # ---- absolute pose L1 partial sums (per lane, sublane reduce only) ------
    a = jnp.abs(d)
    a_t = jnp.where(is_trans, a, 0.0)
    s_t = jnp.sum(a_t, axis=0, keepdims=True)          # (1, bn)
    s_all = jnp.sum(a, axis=0, keepdims=True)          # (1, bn)
    acc_t[...] += s_t
    acc_q[...] += s_all - s_t

    # ---- calc_vos_simple relative L1 partial sums ----------------------------
    # d_next[r] = d[(r+1) % rows] via XLU sublane roll (shift = rows-1 == -1).
    d_next = pltpu.roll(d, shift=rows - 1, axis=0)
    vo = jnp.abs(d_next - d)
    # Pair (r, r+1) valid iff row r is real and r, r+1 share a component.
    pair_ok = jnp.logical_and(row_id < valid_rows, (row_id % T) != (T - 1))
    vo = jnp.where(pair_ok, vo, 0.0)
    vo_t = jnp.where(is_trans, vo, 0.0)
    sv_t = jnp.sum(vo_t, axis=0, keepdims=True)
    sv_all = jnp.sum(vo, axis=0, keepdims=True)
    acc_vt[...] += sv_t
    acc_vq[...] += sv_all - sv_t

    # ---- finalize: single cross-lane reduce + pre-folded weights ------------
    @pl.when(pid == pl.num_programs(0) - 1)
    def _():
        loss = (w_ref[0] * jnp.sum(acc_t[...], axis=1, keepdims=True)
                + w_ref[1] * jnp.sum(acc_q[...], axis=1, keepdims=True)
                + w_ref[2] * jnp.sum(acc_vt[...], axis=1, keepdims=True)
                + w_ref[3] * jnp.sum(acc_vq[...], axis=1, keepdims=True)
                + w_ref[4])
        out_ref[...] = loss


# ---------------------------------- wrapper ---------------------------------
def mapnet_criterion(pred, targ, sax=0.0, saq=0.0, srx=0.0, srq=0.0,
                     *, small_input_fallback_elems=0):
    """pred, targ: (N, T, D) with D >= 4 (translation = [:3], rotation = [3:]).

    Returns the scalar MapNet pose loss (dual_target=False path).
    `small_input_fallback_elems`: if N*T*D is below this threshold, use the
    pure-XLA path (tiny inputs are launch-overhead bound); 0 disables it so the
    kernel is always exercised.
    """
    N, T, D = pred.shape
    assert targ.shape == (N, T, D)
    assert T >= 2 and D >= 4

    if N * T * D < small_input_fallback_elems:
        return _reference(pred, targ, sax, saq, srx, srq)

    rows = D * T
    rows_pad = ((rows + 7) // 8) * 8                   # full sublane tiles
    dt = jnp.result_type(pred.dtype, targ.dtype)
    itemsize = jnp.dtype(dt).itemsize

    # Layout plumbing only: (N, T, D) -> (D, T, N) -> (D*T, N); keep input
    # dtype (bf16 stays bf16); stack pred/targ on a leading axis -> one stream.
    def to_slab(x):
        return jnp.transpose(x.astype(dt), (2, 1, 0)).reshape(rows, N)

    slab = jnp.stack([to_slab(pred), to_slab(targ)], axis=0)   # (2, rows, N)

    # Lane tiling: single block whenever N fits; otherwise large lane blocks
    # under a VMEM budget.  Zero padding is exact.
    LANE = 128
    try:
        kind = jax.devices()[0].device_kind.lower()
    except Exception:
        kind = ""
    max_bn = 8192 if "v7" in kind else 4096            # bigger steps on v7x HBM
    vmem_budget = 16 * 1024 * 1024                     # double-buffered stacked input
    bn_cap = max(LANE, (vmem_budget // (2 * 2 * rows_pad * itemsize)) // LANE * LANE)
    n_lane = pl.cdiv(N, LANE) * LANE
    bn = min(n_lane, max_bn, bn_cap)
    n_pad = pl.cdiv(N, bn) * bn
    if rows_pad != rows or n_pad != N:
        slab = jnp.pad(slab, ((0, 0), (0, rows_pad - rows), (0, n_pad - N)))

    # Fold exp(-s) and the 1/count means into SMEM scalars; bias = sum of s.
    sax = jnp.asarray(sax, jnp.float32)
    saq = jnp.asarray(saq, jnp.float32)
    srx = jnp.asarray(srx, jnp.float32)
    srq = jnp.asarray(srq, jnp.float32)
    w = jnp.stack([
        jnp.exp(-sax) / (N * T * 3),
        jnp.exp(-saq) / (N * T * (D - 3)),
        jnp.exp(-srx) / (N * (T - 1) * 3),
        jnp.exp(-srq) / (N * (T - 1) * (D - 3)),
        sax + saq + srx + srq,
    ]).astype(jnp.float32)

    kernel = functools.partial(_mapnet_criterion_kernel, T=T, valid_rows=rows)

    out = pl.pallas_call(
        kernel,
        out_shape=jax.ShapeDtypeStruct((1, 1), jnp.float32),
        grid_spec=pltpu.PrefetchScalarGridSpec(
            num_scalar_prefetch=0,
            grid=(n_pad // bn,),
            in_specs=[
                pl.BlockSpec(memory_space=pltpu.MemorySpace.SMEM),      # weights
                pl.BlockSpec((2, rows_pad, bn), lambda i: (0, 0, i)),   # stacked slab
            ],
            out_specs=pl.BlockSpec((1, 1), lambda i: (0, 0)),
            scratch_shapes=[pltpu.VMEM((1, bn), jnp.float32)] * 4,
        ),
        compiler_params=pltpu.CompilerParams(
            dimension_semantics=("arbitrary",),        # sequential reduction axis
            vmem_limit_bytes=32 * 1024 * 1024,
        ),
    )(w, slab)
    return out[0, 0]


# ------------------------------ pure-JAX reference ---------------------------
def _reference(pred, targ, sax, saq, srx, srq):
    N, T, D = pred.shape
    pred_vos = pred[:, 1:] - pred[:, :-1]              # calc_vos_simple
    targ_vos = targ[:, 1:] - targ[:, :-1]
    p = pred.reshape(-1, D)
    t = targ.reshape(-1, D)
    pv = pred_vos.reshape(-1, D)
    tv = targ_vos.reshape(-1, D)
    t_loss = jnp.mean(jnp.abs(p[:, :3] - t[:, :3]))
    q_loss = jnp.mean(jnp.abs(p[:, 3:] - t[:, 3:]))
    vo_t_loss = jnp.mean(jnp.abs(pv[:, :3] - tv[:, :3]))
    vo_q_loss = jnp.mean(jnp.abs(pv[:, 3:] - tv[:, 3:]))
    abs_loss = jnp.exp(-sax) * t_loss + sax + jnp.exp(-saq) * q_loss + saq
    vo_loss = jnp.exp(-srx) * vo_t_loss + srx + jnp.exp(-srq) * vo_q_loss + srq
    return abs_loss + vo_loss


# ------------------------------------ main -----------------------------------
if __name__ == "__main__":
    key = jax.random.PRNGKey(0)
    k1, k2, k3, k4 = jax.random.split(key, 4)

    # Module parameters (sax/saq/srx/srq from __init__); -3.0 rotations make
    # the exp weights non-trivial.
    sax, saq, srx, srq = 0.0, -3.0, 0.0, -3.0

    # Case 1: small shapes matching the module docstring (N x T x 6).
    pred1 = jax.random.normal(k1, (2, 8, 6), dtype=jnp.float32)
    targ1 = jax.random.normal(k2, (2, 8, 6), dtype=jnp.float32)
    loss1 = jax.block_until_ready(mapnet_criterion(pred1, targ1, sax, saq, srx, srq))
    ref1 = jax.block_until_ready(_reference(pred1, targ1, sax, saq, srx, srq))
    assert abs(float(loss1) - float(ref1)) < 1e-3 * (1.0 + abs(float(ref1))), (loss1, ref1)

    # Case 2: 7-dof poses, non-8-aligned rows (21 -> 24) + lane padding (600 -> 640),
    # still a single grid step after the block-size fix.
    pred2 = jax.random.normal(k3, (600, 3, 7), dtype=jnp.float32)
    targ2 = jax.random.normal(k4, (600, 3, 7), dtype=jnp.float32)
    loss2 = jax.block_until_ready(mapnet_criterion(pred2, targ2, sax, saq, srx, srq))
    ref2 = jax.block_until_ready(_reference(pred2, targ2, sax, saq, srx, srq))
    assert abs(float(loss2) - float(ref2)) < 1e-3 * (1.0 + abs(float(ref2))), (loss2, ref2)

    print("KERNEL_OK")
</pallas_src>

<mosaic_0001>
module attributes {stable_mosaic.version = 11 : i64} {
  func.func @_mapnet_criterion_kernel(%arg0: i32, %arg1: memref<5xf32, #tpu.memory_space<smem>>, %arg2: memref<2x48x128xf32, #tpu.memory_space<vmem>>, %arg3: memref<1x1xf32, #tpu.memory_space<vmem>>, %arg4: memref<1x128xf32, #tpu.memory_space<vmem>>, %arg5: memref<1x128xf32, #tpu.memory_space<vmem>>, %arg6: memref<1x128xf32, #tpu.memory_space<vmem>>, %arg7: memref<1x128xf32, #tpu.memory_space<vmem>>) attributes {dimension_semantics = [#tpu.dimension_semantics<arbitrary>], iteration_bounds = array<i64: 1>, scalar_prefetch = 0 : i64, scratch_operands = 4 : i64, tpu.core_type = #tpu.core_type<tc>, window_params = [{transform_indices = @transform_0, window_bounds = array<i64: 5>}, {transform_indices = @transform_1, window_bounds = array<i64: 2, 48, 128>}, {pipeline_mode = #tpu.pipeline_mode<synchronous>, transform_indices = @transform_2, window_bounds = array<i64: 1, 1>}]} {
    %c0_i32 = arith.constant 0 : i32
    %0 = arith.cmpi eq, %arg0, %c0_i32 : i32
    %1 = arith.extui %0 : i1 to i32
    %c0_i32_0 = arith.constant 0 : i32
    %2 = arith.cmpi ne, %1, %c0_i32_0 : i32
    scf.if %2 {
      %cst_33 = arith.constant 0.000000e+00 : f32
      %73 = vector.broadcast %cst_33 : f32 to vector<1x128xf32>
      %c0_34 = arith.constant 0 : index
      %c0_35 = arith.constant 0 : index
      %74 = vector.load %arg4[%c0_34, %c0_35] : memref<1x128xf32, #tpu.memory_space<vmem>>, vector<1x128xf32>
      tpu.vector_store %arg4[%c0_34, %c0_35], %73 {strides = array<i32>} : memref<1x128xf32, #tpu.memory_space<vmem>>, vector<1x128xf32>,
      %cst_36 = arith.constant 0.000000e+00 : f32
      %75 = vector.broadcast %cst_36 : f32 to vector<1x128xf32>
      %c0_37 = arith.constant 0 : index
      %c0_38 = arith.constant 0 : index
      %76 = vector.load %arg5[%c0_37, %c0_38] : memref<1x128xf32, #tpu.memory_space<vmem>>, vector<1x128xf32>
      tpu.vector_store %arg5[%c0_37, %c0_38], %75 {strides = array<i32>} : memref<1x128xf32, #tpu.memory_space<vmem>>, vector<1x128xf32>,
      %cst_39 = arith.constant 0.000000e+00 : f32
      %77 = vector.broadcast %cst_39 : f32 to vector<1x128xf32>
      %c0_40 = arith.constant 0 : index
      %c0_41 = arith.constant 0 : index
      %78 = vector.load %arg6[%c0_40, %c0_41] : memref<1x128xf32, #tpu.memory_space<vmem>>, vector<1x128xf32>
      tpu.vector_store %arg6[%c0_40, %c0_41], %77 {strides = array<i32>} : memref<1x128xf32, #tpu.memory_space<vmem>>, vector<1x128xf32>,
      %cst_42 = arith.constant 0.000000e+00 : f32
      %79 = vector.broadcast %cst_42 : f32 to vector<1x128xf32>
      %c0_43 = arith.constant 0 : index
      %c0_44 = arith.constant 0 : index
      %80 = vector.load %arg7[%c0_43, %c0_44] : memref<1x128xf32, #tpu.memory_space<vmem>>, vector<1x128xf32>
      tpu.vector_store %arg7[%c0_43, %c0_44], %79 {strides = array<i32>} : memref<1x128xf32, #tpu.memory_space<vmem>>, vector<1x128xf32>,
    } else {
    }
    %c0 = arith.constant 0 : index
    %c0_1 = arith.constant 0 : index
    %c0_2 = arith.constant 0 : index
    %3 = vector.load %arg2[%c0, %c0_1, %c0_2] : memref<2x48x128xf32, #tpu.memory_space<vmem>>, vector<1x48x128xf32>
    %4 = vector.shape_cast %3 : vector<1x48x128xf32> to vector<48x128xf32>
    %c1 = arith.constant 1 : index
    %c0_3 = arith.constant 0 : index
    %c0_4 = arith.constant 0 : index
    %5 = vector.load %arg2[%c1, %c0_3, %c0_4] : memref<2x48x128xf32, #tpu.memory_space<vmem>>, vector<1x48x128xf32>
    %6 = vector.shape_cast %5 : vector<1x48x128xf32> to vector<48x128xf32>
    %7 = arith.subf %4, %6 : vector<48x128xf32>
    %8 = tpu.iota {dimensions = array<i32: 0>} : vector<48x1xi32>
    %c24_i32 = arith.constant 24 : i32
    %9 = vector.broadcast %c24_i32 : i32 to vector<48x1xi32>
    %10 = arith.cmpi slt, %8, %9 : vector<48x1xi32>
    %11 = math.absf %7 : vector<48x128xf32>
    %cst = arith.constant 0.000000e+00 : f32
    %12 = vector.shape_cast %10 : vector<48x1xi1> to vector<48x1xi1>
    %13 = vector.broadcast %12 : vector<48x1xi1> to vector<48x128xi1>
    %14 = vector.broadcast %cst : f32 to vector<48x128xf32>
    %15 = arith.select %13, %11, %14 : vector<48x128xi1>, vector<48x128xf32>
    %cst_5 = arith.constant dense<0.000000e+00> : vector<128xf32>
    %16 = vector.multi_reduction <add>, %15, %cst_5 [0] : vector<48x128xf32> to vector<128xf32>
    %17 = vector.shape_cast %16 : vector<128xf32> to vector<1x128xf32>
    %cst_6 = arith.constant dense<0.000000e+00> : vector<128xf32>
    %18 = vector.multi_reduction <add>, %11, %cst_6 [0] : vector<48x128xf32> to vector<128xf32>
    %19 = vector.shape_cast %18 : vector<128xf32> to vector<1x128xf32>
    %c0_7 = arith.constant 0 : index
    %c0_8 = arith.constant 0 : index
    %20 = vector.load %arg4[%c0_7, %c0_8] : memref<1x128xf32, #tpu.memory_space<vmem>>, vector<1x128xf32>
    %21 = arith.addf %20, %17 : vector<1x128xf32>
    %c0_9 = arith.constant 0 : index
    %c0_10 = arith.constant 0 : index
    %22 = vector.load %arg4[%c0_9, %c0_10] : memref<1x128xf32, #tpu.memory_space<vmem>>, vector<1x128xf32>
    tpu.vector_store %arg4[%c0_9, %c0_10], %21 {strides = array<i32>} : memref<1x128xf32, #tpu.memory_space<vmem>>, vector<1x128xf32>,
    %c0_11 = arith.constant 0 : index
    %c0_12 = arith.constant 0 : index
    %23 = vector.load %arg5[%c0_11, %c0_12] : memref<1x128xf32, #tpu.memory_space<vmem>>, vector<1x128xf32>
    %24 = arith.subf %19, %17 : vector<1x128xf32>
    %25 = arith.addf %23, %24 : vector<1x128xf32>
    %c0_13 = arith.constant 0 : index
    %c0_14 = arith.constant 0 : index
    %26 = vector.load %arg5[%c0_13, %c0_14] : memref<1x128xf32, #tpu.memory_space<vmem>>, vector<1x128xf32>
    tpu.vector_store %arg5[%c0_13, %c0_14], %25 {strides = array<i32>} : memref<1x128xf32, #tpu.memory_space<vmem>>, vector<1x128xf32>,
    %c47_i32 = arith.constant 47 : i32
    %27 = tpu.dynamic_rotate %7 by %c47_i32 dim 0 : vector<48x128xf32>, i32 -> vector<48x128xf32>
    %28 = arith.subf %27, %7 : vector<48x128xf32>
    %29 = math.absf %28 : vector<48x128xf32>
    %c48_i32 = arith.constant 48 : i32
    %30 = vector.broadcast %c48_i32 : i32 to vector<48x1xi32>
    %31 = arith.cmpi slt, %8, %30 : vector<48x1xi32>
    %c8_i32 = arith.constant 8 : i32
    %c0_i32_15 = arith.constant 0 : i32
    %32 = arith.cmpi eq, %c8_i32, %c0_i32_15 : i32
    %c1_i32 = arith.constant 1 : i32
    %33 = arith.select %32, %c1_i32, %c8_i32 : i32
    %34 = vector.broadcast %33 : i32 to vector<48x1xi32>
    %35 = arith.remsi %8, %34 : vector<48x1xi32>
    %c0_i32_16 = arith.constant 0 : i32
    %36 = vector.broadcast %c0_i32_16 : i32 to vector<48x1xi32>
    %37 = arith.cmpi ne, %35, %36 : vector<48x1xi32>
    %c0_i32_17 = arith.constant 0 : i32
    %38 = vector.broadcast %c0_i32_17 : i32 to vector<48x1xi32>
    %39 = arith.cmpi slt, %35, %38 : vector<48x1xi32>
    %c0_i32_18 = arith.constant 0 : i32
    %40 = arith.cmpi slt, %33, %c0_i32_18 : i32
    %41 = vector.broadcast %40 : i1 to vector<48x1xi1>
    %42 = vector.broadcast %41 : vector<48x1xi1> to vector<48x1xi1>
    %43 = arith.xori %39, %42 : vector<48x1xi1>
    %44 = arith.andi %43, %37 : vector<48x1xi1>
    %45 = vector.broadcast %33 : i32 to vector<48x1xi32>
    %46 = arith.addi %35, %45 : vector<48x1xi32>
    %47 = arith.select %44, %46, %35 : vector<48x1xi1>, vector<48x1xi32>
    %c7_i32 = arith.constant 7 : i32
    %48 = vector.broadcast %c7_i32 : i32 to vector<48x1xi32>
    %49 = arith.cmpi ne, %47, %48 : vector<48x1xi32>
    %50 = arith.andi %31, %49 : vector<48x1xi1>
    %cst_19 = arith.constant 0.000000e+00 : f32
    %51 = vector.shape_cast %50 : vector<48x1xi1> to vector<48x1xi1>
    %52 = vector.broadcast %51 : vector<48x1xi1> to vector<48x128xi1>
    %53 = vector.broadcast %cst_19 : f32 to vector<48x128xf32>
    %54 = arith.select %52, %29, %53 : vector<48x128xi1>, vector<48x128xf32>
    %cst_20 = arith.constant 0.000000e+00 : f32
    %55 = vector.shape_cast %10 : vector<48x1xi1> to vector<48x1xi1>
    %56 = vector.broadcast %55 : vector<48x1xi1> to vector<48x128xi1>
    %57 = vector.broadcast %cst_20 : f32 to vector<48x128xf32>
    %58 = arith.select %56, %54, %57 : vector<48x128xi1>, vector<48x128xf32>
    %cst_21 = arith.constant dense<0.000000e+00> : vector<128xf32>
    %59 = vector.multi_reduction <add>, %58, %cst_21 [0] : vector<48x128xf32> to vector<128xf32>
    %60 = vector.shape_cast %59 : vector<128xf32> to vector<1x128xf32>
    %cst_22 = arith.constant dense<0.000000e+00> : vector<128xf32>
    %61 = vector.multi_reduction <add>, %54, %cst_22 [0] : vector<48x128xf32> to vector<128xf32>
    %62 = vector.shape_cast %61 : vector<128xf32> to vector<1x128xf32>
    %c0_23 = arith.constant 0 : index
    %c0_24 = arith.constant 0 : index
    %63 = vector.load %arg6[%c0_23, %c0_24] : memref<1x128xf32, #tpu.memory_space<vmem>>, vector<1x128xf32>
    %64 = arith.addf %63, %60 : vector<1x128xf32>
    %c0_25 = arith.constant 0 : index
    %c0_26 = arith.constant 0 : index
    %65 = vector.load %arg6[%c0_25, %c0_26] : memref<1x128xf32, #tpu.memory_space<vmem>>, vector<1x128xf32>
    tpu.vector_store %arg6[%c0_25, %c0_26], %64 {strides = array<i32>} : memref<1x128xf32, #tpu.memory_space<vmem>>, vector<1x128xf32>,
    %c0_27 = arith.constant 0 : index
    %c0_28 = arith.constant 0 : index
    %66 = vector.load %arg7[%c0_27, %c0_28] : memref<1x128xf32, #tpu.memory_space<vmem>>, vector<1x128xf32>
    %67 = arith.subf %62, %60 : vector<1x128xf32>
    %68 = arith.addf %66, %67 : vector<1x128xf32>
    %c0_29 = arith.constant 0 : index
    %c0_30 = arith.constant 0 : index
    %69 = vector.load %arg7[%c0_29, %c0_30] : memref<1x128xf32, #tpu.memory_space<vmem>>, vector<1x128xf32>
    tpu.vector_store %arg7[%c0_29, %c0_30], %68 {strides = array<i32>} : memref<1x128xf32, #tpu.memory_space<vmem>>, vector<1x128xf32>,
    %c0_i32_31 = arith.constant 0 : i32
    %70 = arith.cmpi eq, %arg0, %c0_i32_31 : i32
    %71 = arith.extui %70 : i1 to i32
    %c0_i32_32 = arith.constant 0 : i32
    %72 = arith.cmpi ne, %71, %c0_i32_32 : i32
    scf.if %72 {
      %c0_33 = arith.constant 0 : index
      %73 = memref.load %arg1[%c0_33] : memref<5xf32, #tpu.memory_space<smem>>
      %c0_34 = arith.constant 0 : index
      %c0_35 = arith.constant 0 : index
      %74 = vector.load %arg4[%c0_34, %c0_35] : memref<1x128xf32, #tpu.memory_space<vmem>>, vector<1x128xf32>
      %cst_36 = arith.constant dense<0.000000e+00> : vector<1xf32>
      %75 = vector.multi_reduction <add>, %74, %cst_36 [1] : vector<1x128xf32> to vector<1xf32>
      %76 = vector.shape_cast %75 : vector<1xf32> to vector<1x1xf32>
      %77 = vector.broadcast %73 : f32 to vector<1x1xf32>
      %78 = arith.mulf %77, %76 : vector<1x1xf32>
      %c1_37 = arith.constant 1 : index
      %79 = memref.load %arg1[%c1_37] : memref<5xf32, #tpu.memory_space<smem>>
      %c0_38 = arith.constant 0 : index
      %c0_39 = arith.constant 0 : index
      %80 = vector.load %arg5[%c0_38, %c0_39] : memref<1x128xf32, #tpu.memory_space<vmem>>, vector<1x128xf32>
      %cst_40 = arith.constant dense<0.000000e+00> : vector<1xf32>
      %81 = vector.multi_reduction <add>, %80, %cst_40 [1] : vector<1x128xf32> to vector<1xf32>
      %82 = vector.shape_cast %81 : vector<1xf32> to vector<1x1xf32>
      %83 = vector.broadcast %79 : f32 to vector<1x1xf32>
      %84 = arith.mulf %83, %82 : vector<1x1xf32>
      %85 = arith.addf %78, %84 : vector<1x1xf32>
      %c2 = arith.constant 2 : index
      %86 = memref.load %arg1[%c2] : memref<5xf32, #tpu.memory_space<smem>>
      %c0_41 = arith.constant 0 : index
      %c0_42 = arith.constant 0 : index
      %87 = vector.load %arg6[%c0_41, %c0_42] : memref<1x128xf32, #tpu.memory_space<vmem>>, vector<1x128xf32>
      %cst_43 = arith.constant dense<0.000000e+00> : vector<1xf32>
      %88 = vector.multi_reduction <add>, %87, %cst_43 [1] : vector<1x128xf32> to vector<1xf32>
      %89 = vector.shape_cast %88 : vector<1xf32> to vector<1x1xf32>
      %90 = vector.broadcast %86 : f32 to vector<1x1xf32>
      %91 = arith.mulf %90, %89 : vector<1x1xf32>
      %92 = arith.addf %85, %91 : vector<1x1xf32>
      %c3 = arith.constant 3 : index
      %93 = memref.load %arg1[%c3] : memref<5xf32, #tpu.memory_space<smem>>
      %c0_44 = arith.constant 0 : index
      %c0_45 = arith.constant 0 : index
      %94 = vector.load %arg7[%c0_44, %c0_45] : memref<1x128xf32, #tpu.memory_space<vmem>>, vector<1x128xf32>
      %cst_46 = arith.constant dense<0.000000e+00> : vector<1xf32>
      %95 = vector.multi_reduction <add>, %94, %cst_46 [1] : vector<1x128xf32> to vector<1xf32>
      %96 = vector.shape_cast %95 : vector<1xf32> to vector<1x1xf32>
      %97 = vector.broadcast %93 : f32 to vector<1x1xf32>
      %98 = arith.mulf %97, %96 : vector<1x1xf32>
      %99 = arith.addf %92, %98 : vector<1x1xf32>
      %c4 = arith.constant 4 : index
      %100 = memref.load %arg1[%c4] : memref<5xf32, #tpu.memory_space<smem>>
      %101 = vector.broadcast %100 : f32 to vector<1x1xf32>
      %102 = arith.addf %99, %101 : vector<1x1xf32>
      %c0_47 = arith.constant 0 : index
      %c0_48 = arith.constant 0 : index
      %103 = vector.load %arg3[%c0_47, %c0_48] : memref<1x1xf32, #tpu.memory_space<vmem>>, vector<1x1xf32>
      tpu.vector_store %arg3[%c0_47, %c0_48], %102 {strides = array<i32>} : memref<1x1xf32, #tpu.memory_space<vmem>>, vector<1x1xf32>,
    } else {
    }
    return
  }
  func.func @transform_0(%arg0: i32) -> i32 {
    %c0_i32 = arith.constant 0 : i32
    %c0_i32_0 = arith.constant 0 : i32
    return %c0_i32 : i32
  }
  func.func @transform_1(%arg0: i32) -> (i32, i32, i32) {
    %c0_i32 = arith.constant 0 : i32
    %c0_i32_0 = arith.constant 0 : i32
    %c0_i32_1 = arith.constant 0 : i32
    return %c0_i32, %c0_i32_0, %arg0 : i32, i32, i32
  }
  func.func @transform_2(%arg0: i32) -> (i32, i32) {
    %c0_i32 = arith.constant 0 : i32
    %c0_i32_0 = arith.constant 0 : i32
    %c0_i32_1 = arith.constant 0 : i32
    return %c0_i32, %c0_i32_0 : i32, i32
  }
}

</mosaic_0001>

<bundles_post_ra>
// kernel: tpu_custom_call.1
= control target key start
LH: loop header
LB: loop body
LE: loop exit
PB: predicated region body
PF: predicated region fallthrough
CT: control target
= control target key end

     0   :  { %7 = vsyncpa [#allocation9], 0  ;;  %s530_s0 = inlined_call_operand.hbm [shape: f32[5], index: 0, kind: input, shape index: {}]   ;;  %s531_s1 = inlined_call_operand.hbm [shape: f32[2,48,128], index: 1, kind: input, shape index: {}]   ;;  %s532_s2 = inlined_call_operand.hbm [shape: f32[1,1], index: 2, kind: output, shape index: {}]  }
   0x1   :  { %8 = vsyncpa [#allocation7], 0 }
   0x2   :  { %9 = vsyncpa [#allocation8], 0  ;;  %s15_s11 = sshll.u32 %s530_s0, 4  ;;  %s23_s14 = sshll.u32 %s531_s1, 4  ;;  %s16_s11 = int_to_ptr.hbm [resolvable:$true] %s15_s11  ;;  %s24_s14 = int_to_ptr.hbm [resolvable:$true] %s23_s14 }
   0x3   :  { %s436_s15 = smov [#allocation6]   ;;  %s437_s16 = smov [#allocation10]  }
   0x4   :  { %18 = dma.hbm_to_smem %s16_s11, 16, %s436_s15, [#allocation9]  }
   0x5   :  { %s25_s17 = sshll.u32 %s437_s16, 4  ;;  %s438_s18 = smov 128   ;;  %s26_s17 = int_to_ptr.vmem [resolvable:$true] %s25_s17 }
   0x6   :  { %s439_s19 = smov 8  }
   0x7   :  { %31 = dma.hbm_to_vmem [thread:$0]  %s24_s14, 1536, %s26_s17, [#allocation7], %s438_s18, %s438_s18, %s439_s19  }
   0x8   :  { %430 = dma.done.wait [#allocation9], 16  }
   0x9   :  { %431 = vsyncadd [#allocation9], 4294967280 }
   0xa   :  { %432 = dma.done.wait [#allocation7], 1536  }
   0xb   :  { %433 = vsyncadd [#allocation7], 4294965760 }
   0xc   :  { %40 = sfence }
   0xd   :  { %v49_v0 = vld [vmem:[#allocation10] sm:$0xff]  ;;  %v50_v1 = vld [vmem:[#allocation10 + $0x8] sm:$0xff]  ;;  %v51_v2 = vld [vmem:[#allocation10 + $0x10] sm:$0xff]  ;;  %v68_v3 = vlaneseq  ;;  %v440_v4 = vmov 0.0   ;;  %vm307_vm7 = vcmask 1040384   ;;  %s360_s0 = sld [smem:[#allocation6 + $0x1]] }
   0xe   :  { %45 = vst [vmem:[#allocation2] sm:$0x1] %v440_v4  ;;  %v56_v5 = vld [vmem:[#allocation10 + $0x30] sm:$0xff]  ;;  %v57_v6 = vld [vmem:[#allocation10 + $0x38] sm:$0xff]  ;;  %v58_v7 = vld [vmem:[#allocation10 + $0x40] sm:$0xff]  ;;  %s305_s1 = sld [smem:[#allocation6]] }
   0xf   :  { %v463_v8 = vsub.f32 %v49_v0, %v56_v5  ;;  %v63_v9 = vsub.f32 %v50_v1, %v57_v6  ;;  %v64_v10 = vsub.f32 %v51_v2, %v58_v7  ;;  %46 = vst [vmem:[#allocation3] sm:$0x1] %v440_v4  ;;  %v52_v11 = vld [vmem:[#allocation10 + $0x18] sm:$0xff]  ;;  %v59_v12 = vld [vmem:[#allocation10 + $0x48] sm:$0xff]  ;;  %v465_v13 = vshrl.u32 %v68_v3, 7  ;;  %v53_v14 = vld [vmem:[#allocation10 + $0x20] sm:$0xff] }
  0x10   :  { %47 = vst [vmem:[#allocation4] sm:$0x1] %v440_v4  ;;  %v467_v15 = vsub.f32 %v52_v11, %v59_v12  ;;  %v60_v16 = vld [vmem:[#allocation10 + $0x50] sm:$0xff]  ;;  %v54_v32 = vld [vmem:[#allocation10 + $0x28] sm:$0xff]  ;;  %v61_v33 = vld [vmem:[#allocation10 + $0x58] sm:$0xff]  ;;  %s361_s20 = sld [smem:[#allocation6 + $0x2]] }
  0x11   :  { %v81_v17 = vand.u32 2147483647, %v463_v8  ;;  %v82_v18 = vand.u32 2147483647, %v63_v9  ;;  %v83_v19 = vand.u32 2147483647, %v64_v10  ;;  %v470_v20 = vsub.f32 %v53_v14, %v60_v16 }
  0x12   :  { %48 = vst [vmem:[#allocation5] sm:$0x1] %v440_v4  ;;  %v70_v21 = vadd.s32 8, %v465_v13  ;;  %v71_v22 = vadd.s32 16, %v465_v13  ;;  %v134_v23 = vrot.slane %v463_v8, 1  ;;  %v135_v24 = vrot.slane %v63_v9, 1 }
  0x13   :  { %v105_v25 = vadd.f32 %v82_v18, %v81_v17  ;;  %v136_v26 = vrot.slane %v64_v10, 1  ;;  %v137_v27 = vrot.slane %v467_v15, 1  ;;  %vm140_vm0 = vcmp.lt.s32.totalorder %v465_v13, 7  ;;  %s362_s21 = sld [smem:[#allocation6 + $0x3]]  ;;  %s441_s23 = smov [#allocation11]  }
  0x14   :  { %v145_v28 = vsel %vm140_vm0, %v134_v23, %v135_v24  ;;  %v169_v29 = vand.u32 7, %v465_v13  ;;  %v176_v30 = vand.u32 7, %v70_v21  ;;  %v183_v31 = vand.u32 7, %v71_v22  ;;  %s363_s22 = sld [smem:[#allocation6 + $0x4]]  ;;  %s347_s24 = sshll.u32 %s441_s23, 4  ;;  %s348_s24 = int_to_ptr.vmem [resolvable:$true] %s347_s24 }
  0x15   :  { %v106_v34 = vadd.f32 %v105_v25, %v83_v19  ;;  %v143_v35 = vsel %vm140_vm0, %v136_v26, %v137_v27  ;;  %v144_v36 = vsel %vm140_vm0, %v135_v24, %v136_v26  ;;  %v147_v37 = vsub.f32 %v145_v28, %v463_v8  ;;  %v127_v14 = vld [vmem:[#allocation2] sm:$0x1]  ;;  %s349_s27 = sshll.u32 %s532_s2, 4  ;;  %s350_s27 = int_to_ptr.hbm [resolvable:$true] %s349_s27 }
  0x16   :  { %v148_v38 = vsub.f32 %v144_v36, %v63_v9  ;;  %v149_v39 = vsub.f32 %v143_v35, %v64_v10  ;;  %vm485_vm1 = vcmp.ne.s32.totalorder %v169_v29, 7  ;;  %vm489_vm2 = vcmp.ne.s32.totalorder %v176_v30, 7  ;;  %v130_v41 = vld [vmem:[#allocation3] sm:$0x1] }
  0x17   :  { %v110_v42 = vrot.slane %v106_v34, 4  ;;  %v153_v43 = vand.u32 2147483647, %v147_v37  ;;  %vm493_vm3 = vcmp.ne.s32.totalorder %v183_v31, 7  ;;  %v67_v45 = vsub.f32 %v54_v32, %v61_v33 }
  0x18   :  { %v154_v46 = vand.u32 2147483647, %v148_v38  ;;  %v155_v47 = vand.u32 2147483647, %v149_v39  ;;  %v84_v48 = vand.u32 2147483647, %v467_v15 }
  0x19   :  { %v111_v49 = vadd.f32 %v110_v42, %v106_v34  ;;  %v261_v50 = vsel %vm485_vm1, %v153_v43, 0.0  ;;  %v85_v51 = vand.u32 2147483647, %v470_v20  ;;  %v86_v52 = vand.u32 2147483647, %v67_v45 }
  0x1a   :  { %v262_v53 = vsel %vm489_vm2, %v154_v46, 0.0  ;;  %v263_v54 = vsel %vm493_vm3, %v155_v47, 0.0  ;;  %v118_v55 = vadd.f32 %v106_v34, %v84_v48  ;;  %v72_v56 = vadd.s32 24, %v465_v13  ;;  %v295_v34 = vld [vmem:[#allocation4] sm:$0x1] }
  0x1b   :  { %v112_v57 = vrot.slane %v111_v49, 2  ;;  %v273_v58 = vadd.f32 %v262_v53, %v261_v50  ;;  %v73_v59 = vadd.s32 32, %v465_v13  ;;  %v74_v60 = vadd.s32 40, %v465_v13  ;;  %v298_v53 = vld [vmem:[#allocation5] sm:$0x1] }
  0x1c   :  { %v119_v61 = vadd.f32 %v118_v55, %v85_v51  ;;  %v138_v62 = vrot.slane %v470_v20, 1  ;;  %v139_v63 = vrot.slane %v67_v45, 1  ;;  %v190_v0 = vand.u32 7, %v72_v56 }
  0x1d   :  { %v113_v1 = vadd.f32 %v112_v57, %v111_v49  ;;  %v274_v2 = vadd.f32 %v273_v58, %v263_v54  ;;  %v197_v3 = vand.u32 7, %v73_v59  ;;  %v204_v4 = vand.u32 7, %v74_v60 }
  0x1e   :  { %v120_v5 = vadd.f32 %v119_v61, %v86_v52  ;;  %v141_v6 = vsel %vm140_vm0, %v138_v62, %v139_v63  ;;  %v142_v7 = vsel %vm140_vm0, %v137_v27, %v138_v62  ;;  %v146_v8 = vsel %vm140_vm0, %v139_v63, %v134_v23 }
  0x1f   :  { %v114_v9 = vrot.slane %v113_v1, 1  ;;  %v278_v10 = vrot.slane %v274_v2, 4  ;;  %v150_v11 = vsub.f32 %v142_v7, %v467_v15  ;;  %v151_v12 = vsub.f32 %v141_v6, %v470_v20 }
  0x20   :  { %v121_v16 = vrot.slane %v120_v5, 4  ;;  %v152_v17 = vsub.f32 %v146_v8, %v67_v45  ;;  %vm240_vm4 = vcmp.ne.s32.totalorder %v190_v0, 7  ;;  %vm517_vm5 = vcmp.ne.s32.totalorder %v197_v3, 7 }
  0x21   :  { %v115_v19 = vadd.f32 %v114_v9, %v113_v1  ;;  %v279_v21 = vadd.f32 %v278_v10, %v274_v2  ;;  %v156_v22 = vand.u32 2147483647, %v150_v11  ;;  %v157_v24 = vand.u32 2147483647, %v151_v12 }
  0x22   :  { %v122_v13 = vadd.f32 %v121_v16, %v120_v5  ;;  %v158_v23 = vand.u32 2147483647, %v152_v17  ;;  %vm242_vm6 = vcmp.ne.s32.totalorder %v204_v4, 7  ;;  %v318_v62 = vstv %s360_s0 }
  0x23   :  { %v128_v25 = vadd.f32 %v127_v14, %v115_v19  ;;  %v280_v26 = vrot.slane %v279_v21, 2  ;;  %v264_v15 = vsel %vm240_vm4, %v156_v22, 0.0  ;;  %v265_v20 = vsel %vm517_vm5, %v157_v24, 0.0 }
  0x24   :  { %v123_v27 = vrot.slane %v122_v13, 2  ;;  %v286_v28 = vadd.f32 %v274_v2, %v264_v15  ;;  %v266_v30 = vsel %vm242_vm6, %v158_v23, 0.0  ;;  %v311_v0 = vstv %s305_s1 }
  0x25   :  { %129 = vst [vmem:[#allocation2] sm:$0x1] %v128_v25  ;;  %v281_v29 = vadd.f32 %v280_v26, %v279_v21  ;;  %v326_v3 = vstv %s361_s20  ;;  %v334_v5 = vstv %s362_s21  ;;  %v338_v10 = vstv %s363_s22 }
  0x26   :  { %v124_v31 = vadd.f32 %v123_v27, %v122_v13  ;;  %v287_v32 = vadd.f32 %v286_v28, %v265_v20  ;;  %vm340_vm8 = vcmask 0  }
  0x27   :  { %v282_v33 = vrot.slane %v281_v29, 1 }
  0x28   :  { %v125_v35 = vrot.slane %v124_v31, 1  ;;  %v288_v36 = vadd.f32 %v287_v32, %v266_v30 }
  0x29   :  { %v283_v37 = vadd.f32 %v282_v33, %v281_v29 }
  0x2a   :  { %v126_v38 = vadd.f32 %v125_v35, %v124_v31  ;;  %v289_v39 = vrot.slane %v288_v36, 4 }
  0x2b   :  { %v296_v40 = vadd.f32 %v295_v34, %v283_v37 }
  0x2c   :  { %v306_v42 = vld [vmem:[#allocation2] sm:$0x1]  ;;  %v131_v43 = vsub.f32 %v126_v38, %v115_v19  ;;  %v290_v44 = vadd.f32 %v289_v39, %v288_v36 }
  0x2d   :  { %v308_v45 = vsel %vm307_vm7, %v306_v42, 0.0  ;;  %297 = vst [vmem:[#allocation4] sm:$0x1] %v296_v40 }
  0x2e   :  { %309 = vadd.xlane.f32.xlu0 %v308_v45  ;;  %v132_v46 = vadd.f32 %v131_v43, %v130_v41  ;;  %v291_v47 = vrot.slane %v290_v44, 2 }
  0x30   :  { %133 = vst [vmem:[#allocation3] sm:$0x1] %v132_v46  ;;  %v292_v48 = vadd.f32 %v291_v47, %v290_v44 }
  0x32   :  { %v293_v49 = vrot.slane %v292_v48, 1 }
  0x34   :  { %v322_v50 = vld [vmem:[#allocation4] sm:$0x1]  ;;  %v294_v51 = vadd.f32 %v293_v49, %v292_v48 }
  0x35   :  { %v323_v52 = vsel %vm307_vm7, %v322_v50, 0.0 }
  0x36   :  { %324 = vadd.xlane.f32.xlu1 %v323_v52  ;;  %v299_v54 = vsub.f32 %v294_v51, %v283_v37 }
  0x37   :  { %v314_v55 = vld [vmem:[#allocation3] sm:$0x1] }
  0x38   :  { %v315_v56 = vsel %vm307_vm7, %v314_v55, 0.0  ;;  %v300_v57 = vadd.f32 %v299_v54, %v298_v53 }
  0x39   :  { %316 = vadd.xlane.f32.xlu0 %v315_v56 }
  0x3a   :  { %301 = vst [vmem:[#allocation5] sm:$0x1] %v300_v57 }
  0x41   :  { %v330_v58 = vld [vmem:[#allocation5] sm:$0x1] }
  0x42   :  { %v331_v59 = vsel %vm307_vm7, %v330_v58, 0.0 }
  0x43   :  { %332 = vadd.xlane.f32.xlu1 %v331_v59 }
  0xa1   :  { %v310_v60 = vpop.xlane.xlu0 %309 }
  0xa2   :  { %v312_v2 = vmul.f32 %v311_v0, %v310_v60 }
  0xa9   :  { %v325_v61 = vpop.xlane.xlu1 %324 }
  0xaa   :  { %v327_v6 = vmul.f32 %v326_v3, %v325_v61 }
  0xac   :  { %v317_v63 = vpop.xlane.xlu0 %316 }
  0xad   :  { %v319_v1 = vmul.f32 %v318_v62, %v317_v63 }
  0xaf   :  { %v320_v4 = vadd.f32 %v319_v1, %v312_v2 }
  0xb1   :  { %v328_v8 = vadd.f32 %v327_v6, %v320_v4 }
  0xb6   :  { %v333_v7 = vpop.xlane.xlu1 %332 }
  0xb7   :  { %v335_v9 = vmul.f32 %v334_v5, %v333_v7 }
  0xb9   :  { %v336_v11 = vadd.f32 %v335_v9, %v328_v8 }
  0xbb   :  { %v339_v12 = vadd.f32 %v338_v10, %v336_v11 }
  0xbd   :  { %341 = vst.msk [vmem:[#allocation11] sm:$0x1] %vm340_vm8, %v339_v12 }
  0xbe   :  { %352 = dma.vmem_to_hbm [thread:$0]  %s348_s24, 16, %s350_s27, [#allocation8]  }
  0xbf   :  { %434 = dma.done.wait [#allocation8], 16  }
  0xc0   :  { %435 = vsyncadd [#allocation8], 4294967280 }
  0xc1   :  { %357 = vsyncpa [#allocation7], 1 }
  0xc2   :  { %358 = vsyncpa [#allocation8], 1 }
  0xc3   :  { %359 = vsyncpa [#allocation9], 1 }

</bundles_post_ra>
